<compile_context>
chip_gen: v6e
topology: v6e:2x2x1
jax: 0.10.0
libtpu: 0.0.40
codegen_flags: <defaults>
</compile_context>

<pallas_src>
import jax
import jax.numpy as jnp
from jax.experimental import pallas as pl
from jax.experimental.pallas import tpu as pltpu


def _afdf_kernel(x_ref, wr_ref, wi_ref, ws_ref, o_ref):
    # x_ref / o_ref : (2, TM, CP)   plane 0 = real, plane 1 = imag
    # wr / wi / ws  : (CP, CP)      Wr, Wi, Wr + Wi  (fused complex weight)
    xr = x_ref[0]
    xi = x_ref[1]
    # Gauss / Karatsuba 3-multiply complex matmul: (xr + i*xi) @ (wr + i*wi)
    p1 = jnp.dot(xr, wr_ref[...], preferred_element_type=jnp.float32)
    p2 = jnp.dot(xi, wi_ref[...], preferred_element_type=jnp.float32)
    p3 = jnp.dot(xr + xi, ws_ref[...], preferred_element_type=jnp.float32)
    o_ref[0] = p1 - p2
    o_ref[1] = p3 - p1 - p2


def _grouped_to_dense(w, groups):
    """Conv1d(c, c, 1, groups=g) weight (c, c//g, 1) -> dense block-diagonal (c, c)."""
    c, cpg, _ = w.shape
    blocks = w[..., 0].reshape(groups, c // groups, cpg)
    return jax.scipy.linalg.block_diag(*[blocks[g] for g in range(groups)])


def _round_up(x, m):
    return ((x + m - 1) // m) * m


def _fused_weight(a_w_r, a_w_i, d_w_r, d_w_i, groups, c):
    """W = A^T @ F @ D^T @ G (complex (c, c));  forward is  out = x @ W."""
    A = (_grouped_to_dense(a_w_r, groups)
         + 1j * _grouped_to_dense(a_w_i, groups)).astype(jnp.complex64)
    D = (_grouped_to_dense(d_w_r, groups)
         + 1j * _grouped_to_dense(d_w_i, groups)).astype(jnp.complex64)
    k = jnp.arange(c, dtype=jnp.float32)
    phase = 2.0 * jnp.pi * jnp.outer(k, k) / c
    F = (jnp.cos(phase) - 1j * jnp.sin(phase)).astype(jnp.complex64)  # exp(-2*pi*i*mk/c)
    G = jnp.conj(F) / c                                               # exp(+2*pi*i*mk/c)/c
    W = A.T @ F @ D.T @ G
    return jnp.real(W).astype(jnp.float32), jnp.imag(W).astype(jnp.float32)


def block_diagonal_afdf(x, a_w_r, a_w_i, d_w_r, d_w_i, groups, *, tm=256):
    """x: (n, c, 2) float32; *_w_*: (c, c//groups, 1) grouped conv weights."""
    n, c, two = x.shape
    assert two == 2

    # Fuse the entire constant weight chain (A, FFT, D, IFFT) into one matrix.
    Wr, Wi = _fused_weight(a_w_r, a_w_i, d_w_r, d_w_i, groups, c)

    # Pad channels to a lane-dense multiple of 128, batch to the tile size.
    cp = _round_up(max(c, 128), 128)
    tile_m = min(tm, _round_up(n, 8))
    weight_bytes = 3 * cp * cp * 4
    budget = 40 * 1024 * 1024  # sized for v7x's 64 MiB physical VMEM
    while tile_m > 8 and 2 * weight_bytes + 4 * (2 * tile_m * cp * 4) > budget:
        tile_m = max(8, _round_up(tile_m // 2, 8))
    n_pad = _round_up(n, tile_m)

    # Zero-padded weights: padded channels stay zero and never contaminate
    # real channels (padded x columns are zero; padded W rows/cols are zero).
    Wr_p = jnp.zeros((cp, cp), jnp.float32).at[:c, :c].set(Wr)
    Wi_p = jnp.zeros((cp, cp), jnp.float32).at[:c, :c].set(Wi)
    Ws_p = Wr_p + Wi_p  # hoisted so the kernel doesn't re-add it every tile

    # (n, c, 2) -> (2, n_pad, cp): plane 0 = real, plane 1 = imag.
    x_p = jnp.zeros((2, n_pad, cp), jnp.float32)
    x_p = x_p.at[:, :n, :c].set(jnp.transpose(x, (2, 0, 1)))

    grid = (n_pad // tile_m,)
    vmem_est = 2 * weight_bytes + 4 * (2 * tile_m * cp * 4)
    vmem_limit = (min(2 * vmem_est, 48 * 1024 * 1024)
                  if vmem_est > 12 * 1024 * 1024 else None)

    flops = 2 * 3 * n_pad * cp * cp               # 3 real matmuls per tile
    bytes_accessed = 2 * (2 * n_pad * cp * 4) + 3 * cp * cp * 4

    out_p = pl.pallas_call(
        _afdf_kernel,
        out_shape=jax.ShapeDtypeStruct((2, n_pad, cp), jnp.float32),
        grid=grid,
        in_specs=[
            pl.BlockSpec((2, tile_m, cp), lambda i: (0, i, 0)),   # activations
            pl.BlockSpec((cp, cp), lambda i: (0, 0)),             # Wr (resident)
            pl.BlockSpec((cp, cp), lambda i: (0, 0)),             # Wi (resident)
            pl.BlockSpec((cp, cp), lambda i: (0, 0)),             # Wr+Wi (resident)
        ],
        out_specs=pl.BlockSpec((2, tile_m, cp), lambda i: (0, i, 0)),
        compiler_params=pltpu.CompilerParams(
            dimension_semantics=("parallel",),
            vmem_limit_bytes=vmem_limit),
        cost_estimate=pl.CostEstimate(
            flops=flops, transcendentals=0, bytes_accessed=bytes_accessed),
    )(x_p, Wr_p, Wi_p, Ws_p)

    # (2, n_pad, cp) -> (n, c, 2)
    return jnp.transpose(out_p[:, :n, :c], (1, 2, 0))


def _reference(x, a_w_r, a_w_i, d_w_r, d_w_i, groups):
    """Pure-JAX reference matching the PyTorch forward."""
    xc = x[..., 0].astype(jnp.complex64) + 1j * x[..., 1].astype(jnp.complex64)
    Wa = (_grouped_to_dense(a_w_r, groups)
          + 1j * _grouped_to_dense(a_w_i, groups)).astype(jnp.complex64)
    Wd = (_grouped_to_dense(d_w_r, groups)
          + 1j * _grouped_to_dense(d_w_i, groups)).astype(jnp.complex64)
    y = xc @ Wa.T
    y = jnp.fft.fft(y, axis=1)
    y = y @ Wd.T
    y = jnp.fft.ifft(y, axis=1)
    return jnp.stack([jnp.real(y), jnp.imag(y)], axis=-1).astype(jnp.float32)


if __name__ == "__main__":
    # Small shapes consistent with the module: batch=2, channels=16, groups=4.
    n, c, groups = 2, 16, 4
    cpg = c // groups

    key = jax.random.PRNGKey(0)
    kx, k1, k2, k3, k4 = jax.random.split(key, 5)
    x = jax.random.normal(kx, (n, c, 2), dtype=jnp.float32)

    scale = 1.0 / jnp.sqrt(float(cpg))   # ~ Conv1d default init scale
    a_w_r = scale * jax.random.normal(k1, (c, cpg, 1), dtype=jnp.float32)
    a_w_i = scale * jax.random.normal(k2, (c, cpg, 1), dtype=jnp.float32)
    d_w_r = scale * jax.random.normal(k3, (c, cpg, 1), dtype=jnp.float32)
    d_w_i = scale * jax.random.normal(k4, (c, cpg, 1), dtype=jnp.float32)

    out = block_diagonal_afdf(x, a_w_r, a_w_i, d_w_r, d_w_i, groups)
    out = jax.block_until_ready(out)

    ref = _reference(x, a_w_r, a_w_i, d_w_r, d_w_i, groups)
    assert out.shape == (n, c, 2)
    assert jnp.allclose(out, ref, atol=1e-4, rtol=1e-4), "mismatch vs reference"

    print("KERNEL_OK")
</pallas_src>

<mosaic_0001>
module attributes {stable_mosaic.version = 11 : i64} {
  func.func @_afdf_kernel(%arg0: i32, %arg1: memref<2x8x128xf32, #tpu.memory_space<vmem>>, %arg2: memref<128x128xf32, #tpu.memory_space<vmem>>, %arg3: memref<128x128xf32, #tpu.memory_space<vmem>>, %arg4: memref<128x128xf32, #tpu.memory_space<vmem>>, %arg5: memref<2x8x128xf32, #tpu.memory_space<vmem>>) attributes {dimension_semantics = [#tpu.dimension_semantics<parallel>], iteration_bounds = array<i64: 1>, scalar_prefetch = 0 : i64, scratch_operands = 0 : i64, tpu.core_type = #tpu.core_type<tc>, window_params = [{transform_indices = @transform_0, window_bounds = array<i64: 2, 8, 128>}, {pipeline_mode = #tpu.pipeline_mode<synchronous>, transform_indices = @transform_1, window_bounds = array<i64: 128, 128>}, {pipeline_mode = #tpu.pipeline_mode<synchronous>, transform_indices = @transform_2, window_bounds = array<i64: 128, 128>}, {pipeline_mode = #tpu.pipeline_mode<synchronous>, transform_indices = @transform_3, window_bounds = array<i64: 128, 128>}, {transform_indices = @transform_4, window_bounds = array<i64: 2, 8, 128>}]} {
    %c0 = arith.constant 0 : index
    %c0_0 = arith.constant 0 : index
    %c0_1 = arith.constant 0 : index
    %0 = vector.load %arg1[%c0, %c0_0, %c0_1] : memref<2x8x128xf32, #tpu.memory_space<vmem>>, vector<1x8x128xf32>
    %1 = vector.shape_cast %0 : vector<1x8x128xf32> to vector<8x128xf32>
    %c1 = arith.constant 1 : index
    %c0_2 = arith.constant 0 : index
    %c0_3 = arith.constant 0 : index
    %2 = vector.load %arg1[%c1, %c0_2, %c0_3] : memref<2x8x128xf32, #tpu.memory_space<vmem>>, vector<1x8x128xf32>
    %3 = vector.shape_cast %2 : vector<1x8x128xf32> to vector<8x128xf32>
    %c0_4 = arith.constant 0 : index
    %c0_5 = arith.constant 0 : index
    %4 = vector.load %arg2[%c0_4, %c0_5] : memref<128x128xf32, #tpu.memory_space<vmem>>, vector<128x128xf32>
    %cst = arith.constant dense<0.000000e+00> : vector<8x128xf32>
    %5 = tpu.matmul %1, %4, %cst {dimension_numbers = #tpu.dot_dimension_numbers<[1], [0], [0], [1], [0, 0, 1, 1], [], []>} : vector<8x128xf32>, vector<128x128xf32>, vector<8x128xf32> -> vector<8x128xf32>
    %c0_6 = arith.constant 0 : index
    %c0_7 = arith.constant 0 : index
    %6 = vector.load %arg3[%c0_6, %c0_7] : memref<128x128xf32, #tpu.memory_space<vmem>>, vector<128x128xf32>
    %cst_8 = arith.constant dense<0.000000e+00> : vector<8x128xf32>
    %7 = tpu.matmul %3, %6, %cst_8 {dimension_numbers = #tpu.dot_dimension_numbers<[1], [0], [0], [1], [0, 0, 1, 1], [], []>} : vector<8x128xf32>, vector<128x128xf32>, vector<8x128xf32> -> vector<8x128xf32>
    %8 = arith.addf %1, %3 : vector<8x128xf32>
    %c0_9 = arith.constant 0 : index
    %c0_10 = arith.constant 0 : index
    %9 = vector.load %arg4[%c0_9, %c0_10] : memref<128x128xf32, #tpu.memory_space<vmem>>, vector<128x128xf32>
    %cst_11 = arith.constant dense<0.000000e+00> : vector<8x128xf32>
    %10 = tpu.matmul %8, %9, %cst_11 {dimension_numbers = #tpu.dot_dimension_numbers<[1], [0], [0], [1], [0, 0, 1, 1], [], []>} : vector<8x128xf32>, vector<128x128xf32>, vector<8x128xf32> -> vector<8x128xf32>
    %11 = arith.subf %5, %7 : vector<8x128xf32>
    %c0_12 = arith.constant 0 : index
    %c0_13 = arith.constant 0 : index
    %c0_14 = arith.constant 0 : index
    %12 = vector.load %arg5[%c0_12, %c0_13, %c0_14] : memref<2x8x128xf32, #tpu.memory_space<vmem>>, vector<1x8x128xf32>
    %13 = vector.shape_cast %12 : vector<1x8x128xf32> to vector<8x128xf32>
    %14 = vector.shape_cast %11 : vector<8x128xf32> to vector<1x8x128xf32>
    tpu.vector_store %arg5[%c0_12, %c0_13, %c0_14], %14 {strides = array<i32>} : memref<2x8x128xf32, #tpu.memory_space<vmem>>, vector<1x8x128xf32>,
    %15 = arith.subf %10, %5 : vector<8x128xf32>
    %16 = arith.subf %15, %7 : vector<8x128xf32>
    %c1_15 = arith.constant 1 : index
    %c0_16 = arith.constant 0 : index
    %c0_17 = arith.constant 0 : index
    %17 = vector.load %arg5[%c1_15, %c0_16, %c0_17] : memref<2x8x128xf32, #tpu.memory_space<vmem>>, vector<1x8x128xf32>
    %18 = vector.shape_cast %17 : vector<1x8x128xf32> to vector<8x128xf32>
    %19 = vector.shape_cast %16 : vector<8x128xf32> to vector<1x8x128xf32>
    tpu.vector_store %arg5[%c1_15, %c0_16, %c0_17], %19 {strides = array<i32>} : memref<2x8x128xf32, #tpu.memory_space<vmem>>, vector<1x8x128xf32>,
    return
  }
  func.func @transform_0(%arg0: i32) -> (i32, i32, i32) {
    %c0_i32 = arith.constant 0 : i32
    %c0_i32_0 = arith.constant 0 : i32
    %c0_i32_1 = arith.constant 0 : i32
    return %c0_i32, %arg0, %c0_i32_0 : i32, i32, i32
  }
  func.func @transform_1(%arg0: i32) -> (i32, i32) {
    %c0_i32 = arith.constant 0 : i32
    %c0_i32_0 = arith.constant 0 : i32
    %c0_i32_1 = arith.constant 0 : i32
    return %c0_i32, %c0_i32_0 : i32, i32
  }
  func.func @transform_2(%arg0: i32) -> (i32, i32) {
    %c0_i32 = arith.constant 0 : i32
    %c0_i32_0 = arith.constant 0 : i32
    %c0_i32_1 = arith.constant 0 : i32
    return %c0_i32, %c0_i32_0 : i32, i32
  }
  func.func @transform_3(%arg0: i32) -> (i32, i32) {
    %c0_i32 = arith.constant 0 : i32
    %c0_i32_0 = arith.constant 0 : i32
    %c0_i32_1 = arith.constant 0 : i32
    return %c0_i32, %c0_i32_0 : i32, i32
  }
  func.func @transform_4(%arg0: i32) -> (i32, i32, i32) {
    %c0_i32 = arith.constant 0 : i32
    %c0_i32_0 = arith.constant 0 : i32
    %c0_i32_1 = arith.constant 0 : i32
    return %c0_i32, %arg0, %c0_i32_0 : i32, i32, i32
  }
}

</mosaic_0001>

<bundles_post_ra>
// kernel: tpu_custom_call.1
= control target key start
LH: loop header
LB: loop body
LE: loop exit
PB: predicated region body
PF: predicated region fallthrough
CT: control target
= control target key end

     0   :  { %9 = vsyncpa [#allocation3], 0  ;;  %s751_s0 = inlined_call_operand.hbm [shape: f32[2,8,128], index: 0, kind: input, shape index: {}]   ;;  %s752_s1 = inlined_call_operand.hbm [shape: f32[128,128], index: 1, kind: input, shape index: {}]   ;;  %s753_s2 = inlined_call_operand.hbm [shape: f32[128,128], index: 2, kind: input, shape index: {}]   ;;  %s754_s3 = inlined_call_operand.hbm [shape: f32[128,128], index: 3, kind: input, shape index: {}]   ;;  %s755_s4 = inlined_call_operand.hbm [shape: f32[2,8,128], index: 4, kind: output, shape index: {}]  }
   0x1   :  { %10 = vsyncpa [#allocation6], 0 }
   0x2   :  { %11 = vsyncpa [#allocation9], 0 }
   0x3   :  { %12 = vsyncpa [#allocation4], 0  ;;  %s633_s15 = smov [#allocation5]   ;;  %s634_s17 = smov [#allocation2]  }
   0x4   :  { %s30_s16 = sshll.u32 %s633_s15, 4  ;;  %s18_s18 = sshll.u32 %s634_s17, 4  ;;  %s31_s16 = int_to_ptr.vmem [resolvable:$true] %s30_s16  ;;  %s19_s18 = int_to_ptr.vmem [resolvable:$true] %s18_s18 }
   0x5   :  { %s533_s19 = scalar_lea.vmem %s31_s16, 2048  ;;  %p538_p1 = scmp.lt.s32.totalorder %s31_s16, %s31_s16 }
   0x6   :  { %p534_p0 = scmp.ne.s32.totalorder %s31_s16, %s533_s19  ;;  %p539_p2 = scmp.lt.s32.totalorder %s533_s19, %s533_s19 }
   0x8   :  { %p540_p3 = por %p539_p2, %p538_p1 }
   0xa   :  { %p541_p4 = pnand %p540_p3, %p534_p0 }
   0xc   :  { %544 = shalt.err (!%p541_p4)
}
   0xd   :  { %s635_s20 = smov 128   ;;  %s636_s21 = smov 8  }
   0xe   :  { %36 = dma.hbm_to_vmem [thread:$0]  %s752_s1, 2048, %s31_s16, [#allocation6], %s635_s20, %s635_s20, %s636_s21  }
   0xf   :  { %s553_s24 = scalar_lea.vmem %s19_s18, 256  ;;  %p558_p6 = scmp.lt.s32.totalorder %s19_s18, %s19_s18 }
  0x10   :  { %p554_p5 = scmp.ne.s32.totalorder %s19_s18, %s553_s24  ;;  %p559_p7 = scmp.lt.s32.totalorder %s553_s24, %s553_s24 }
  0x12   :  { %p560_p8 = por %p559_p7, %p558_p6 }
  0x14   :  { %p561_p9 = pnand %p560_p8, %p554_p5 }
  0x16   :  { %564 = shalt.err (!%p561_p9)
}
  0x17   :  { %24 = dma.hbm_to_vmem [thread:$0]  %s751_s0, 256, %s19_s18, [#allocation3], %s635_s20, %s635_s20, %s636_s21  }
  0x18   :  { %s637_s27 = smov [#allocation7]   ;;  %s638_s29 = smov [#allocation8]  }
  0x19   :  { %s42_s28 = sshll.u32 %s637_s27, 4  ;;  %s54_s30 = sshll.u32 %s638_s29, 4  ;;  %s43_s28 = int_to_ptr.vmem [resolvable:$true] %s42_s28  ;;  %s55_s30 = int_to_ptr.vmem [resolvable:$true] %s54_s30 }
  0x1a   :  { %s573_s1 = scalar_lea.vmem %s43_s28, 2048  ;;  %p578_p11 = scmp.lt.s32.totalorder %s43_s28, %s43_s28 }
  0x1b   :  { %p574_p10 = scmp.ne.s32.totalorder %s43_s28, %s573_s1  ;;  %p579_p12 = scmp.lt.s32.totalorder %s573_s1, %s573_s1 }
  0x1d   :  { %p580_p13 = por %p579_p12, %p578_p11 }
  0x1f   :  { %p581_p0 = pnand %p580_p13, %p574_p10 }
  0x21   :  { %584 = shalt.err (!%p581_p0)
}
  0x22   :  { %48 = dma.hbm_to_vmem [thread:$0]  %s753_s2, 2048, %s43_s28, [#allocation6], %s635_s20, %s635_s20, %s636_s21  }
  0x23   :  { %s593_s0 = scalar_lea.vmem %s55_s30, 2048  ;;  %p598_p2 = scmp.lt.s32.totalorder %s55_s30, %s55_s30 }
  0x24   :  { %p594_p1 = scmp.ne.s32.totalorder %s55_s30, %s593_s0  ;;  %p599_p3 = scmp.lt.s32.totalorder %s593_s0, %s593_s0 }
  0x26   :  { %p600_p4 = por %p599_p3, %p598_p2 }
  0x28   :  { %p601_p5 = pnand %p600_p4, %p594_p1 }
  0x2a   :  { %604 = shalt.err (!%p601_p5)
}
  0x2b   :  { %60 = dma.hbm_to_vmem [thread:$0]  %s754_s3, 2048, %s55_s30, [#allocation9], %s635_s20, %s635_s20, %s636_s21  }
  0x2c   :  { %625 = dma.done.wait [#allocation3], 256  }
  0x2d   :  { %626 = vsyncadd [#allocation3], 4294967040 }
  0x2e   :  { %627 = dma.done.wait [#allocation6], 4096  }
  0x2f   :  { %628 = vsyncadd [#allocation6], 4294963200 }
  0x30   :  { %629 = dma.done.wait [#allocation9], 2048  }
  0x31   :  { %630 = vsyncadd [#allocation9], 4294965248  ;;  %v639_v0 = vmov 0.0   ;;  %vm640_vm0 = vmmov 0   ;;  %v91_v1 = vld [vmem:[#allocation5 + $0x78] sm:$0xff]  ;;  %v90_v3 = vld [vmem:[#allocation5 + $0x70] sm:$0xff] }
  0x32   :  { %411 = vmatprep.subr.mxu0 %v639_v0  ;;  %446 = vmatprep.subr.mxu1 %v639_v0  ;;  %v177_v2 = vld [vmem:[#allocation7 + $0x78] sm:$0xff]  ;;  %v176_v4 = vld [vmem:[#allocation7 + $0x70] sm:$0xff]  ;;  %v89_v5 = vld [vmem:[#allocation5 + $0x68] sm:$0xff]  ;;  %s641_s2 = smov [#allocation10]  }
  0x33   :  { %443 = vmatprep.mubr.msk.f32.mxu0 %vm640_vm0, %v639_v0  ;;  %478 = vmatprep.mubr.msk.f32.mxu1 %vm640_vm0, %v639_v0  ;;  %v175_v6 = vld [vmem:[#allocation7 + $0x68] sm:$0xff]  ;;  %v88_v7 = vld [vmem:[#allocation5 + $0x60] sm:$0xff]  ;;  %v87_v9 = vld [vmem:[#allocation5 + $0x58] sm:$0xff]  ;;  %s346_s3 = sshll.u32 %s641_s2, 4  ;;  %s347_s3 = int_to_ptr.vmem [resolvable:$true] %s346_s3 }
  0x34   :  { %412 = vmatpush3.msra.mxu0 %v91_v1  ;;  %447 = vmatpush3.msra.mxu1 %v177_v2  ;;  %v174_v8 = vld [vmem:[#allocation7 + $0x60] sm:$0xff]  ;;  %v173_v10 = vld [vmem:[#allocation7 + $0x58] sm:$0xff]  ;;  %v86_v11 = vld [vmem:[#allocation5 + $0x50] sm:$0xff]  ;;  %s605_s9 = scalar_lea.vmem %s347_s3, 256  ;;  %p610_p7 = scmp.lt.s32.totalorder %s347_s3, %s347_s3 }
  0x35   :  { %413 = vmatprep.subr.mxu0 %v639_v0  ;;  %448 = vmatprep.subr.mxu1 %v639_v0  ;;  %v172_v12 = vld [vmem:[#allocation7 + $0x50] sm:$0xff]  ;;  %v85_v13 = vld [vmem:[#allocation5 + $0x48] sm:$0xff]  ;;  %v84_v15 = vld [vmem:[#allocation5 + $0x40] sm:$0xff]  ;;  %p606_p6 = scmp.ne.s32.totalorder %s347_s3, %s605_s9  ;;  %p611_p8 = scmp.lt.s32.totalorder %s605_s9, %s605_s9 }
  0x36   :  { %414 = vmatpush3.msra.mxu0 %v90_v3  ;;  %449 = vmatpush3.msra.mxu1 %v176_v4  ;;  %v171_v14 = vld [vmem:[#allocation7 + $0x48] sm:$0xff]  ;;  %v170_v16 = vld [vmem:[#allocation7 + $0x40] sm:$0xff]  ;;  %v83_v17 = vld [vmem:[#allocation5 + $0x38] sm:$0xff] }
  0x37   :  { %415 = vmatprep.subr.mxu0 %v639_v0  ;;  %450 = vmatprep.subr.mxu1 %v639_v0  ;;  %v169_v18 = vld [vmem:[#allocation7 + $0x38] sm:$0xff]  ;;  %v82_v19 = vld [vmem:[#allocation5 + $0x30] sm:$0xff]  ;;  %v81_v21 = vld [vmem:[#allocation5 + $0x28] sm:$0xff]  ;;  %p612_p9 = por %p611_p8, %p610_p7 }
  0x38   :  { %416 = vmatpush3.msra.mxu0 %v89_v5  ;;  %451 = vmatpush3.msra.mxu1 %v175_v6  ;;  %v168_v20 = vld [vmem:[#allocation7 + $0x30] sm:$0xff]  ;;  %v167_v22 = vld [vmem:[#allocation7 + $0x28] sm:$0xff]  ;;  %v80_v23 = vld [vmem:[#allocation5 + $0x20] sm:$0xff] }
  0x39   :  { %417 = vmatprep.subr.mxu0 %v639_v0  ;;  %452 = vmatprep.subr.mxu1 %v639_v0  ;;  %v166_v24 = vld [vmem:[#allocation7 + $0x20] sm:$0xff]  ;;  %v79_v25 = vld [vmem:[#allocation5 + $0x18] sm:$0xff]  ;;  %v78_v27 = vld [vmem:[#allocation5 + $0x10] sm:$0xff]  ;;  %p613_p10 = pnand %p612_p9, %p606_p6 }
  0x3a   :  { %418 = vmatpush3.msra.mxu0 %v88_v7  ;;  %453 = vmatpush3.msra.mxu1 %v174_v8  ;;  %v165_v26 = vld [vmem:[#allocation7 + $0x18] sm:$0xff]  ;;  %v164_v28 = vld [vmem:[#allocation7 + $0x10] sm:$0xff]  ;;  %v77_v29 = vld [vmem:[#allocation5 + $0x8] sm:$0xff] }
  0x3b   :  { %419 = vmatprep.subr.mxu0 %v639_v0  ;;  %454 = vmatprep.subr.mxu1 %v639_v0  ;;  %v163_v30 = vld [vmem:[#allocation7 + $0x8] sm:$0xff]  ;;  %v76_v31 = vld [vmem:[#allocation5] sm:$0xff]  ;;  %v73_v33 = vld [vmem:[#allocation2] sm:$0xff] }
  0x3c   :  { %420 = vmatpush3.msra.mxu0 %v87_v9  ;;  %455 = vmatpush3.msra.mxu1 %v173_v10  ;;  %v162_v32 = vld [vmem:[#allocation7] sm:$0xff]  ;;  %v75_v34 = vld [vmem:[#allocation2 + $0x8] sm:$0xff]  ;;  %v263_v36 = vld [vmem:[#allocation8 + $0x70] sm:$0xff] }
  0x3d   :  { %421 = vmatprep.subr.mxu0 %v639_v0  ;;  %456 = vmatprep.subr.mxu1 %v639_v0  ;;  %v264_v35 = vld [vmem:[#allocation8 + $0x78] sm:$0xff]  ;;  %v262_v37 = vld [vmem:[#allocation8 + $0x68] sm:$0xff]  ;;  %v261_v38 = vld [vmem:[#allocation8 + $0x60] sm:$0xff]  ;;  %v248_v50 = vadd.f32 %v75_v34, %v73_v33 }
  0x3e   :  { %422 = vmatpush3.msra.mxu0 %v86_v11  ;;  %457 = vmatpush3.msra.mxu1 %v172_v12  ;;  %v260_v39 = vld [vmem:[#allocation8 + $0x58] sm:$0xff]  ;;  %v259_v40 = vld [vmem:[#allocation8 + $0x50] sm:$0xff]  ;;  %v258_v41 = vld [vmem:[#allocation8 + $0x48] sm:$0xff] }
  0x3f   :  { %423 = vmatprep.subr.mxu0 %v639_v0  ;;  %458 = vmatprep.subr.mxu1 %v639_v0  ;;  %v257_v42 = vld [vmem:[#allocation8 + $0x40] sm:$0xff]  ;;  %v256_v43 = vld [vmem:[#allocation8 + $0x38] sm:$0xff]  ;;  %v255_v44 = vld [vmem:[#allocation8 + $0x30] sm:$0xff] }
  0x40   :  { %424 = vmatpush3.msra.mxu0 %v85_v13  ;;  %459 = vmatpush3.msra.mxu1 %v171_v14  ;;  %v254_v45 = vld [vmem:[#allocation8 + $0x28] sm:$0xff]  ;;  %v253_v46 = vld [vmem:[#allocation8 + $0x20] sm:$0xff]  ;;  %v252_v47 = vld [vmem:[#allocation8 + $0x18] sm:$0xff] }
  0x41   :  { %425 = vmatprep.subr.mxu0 %v639_v0  ;;  %460 = vmatprep.subr.mxu1 %v639_v0  ;;  %v251_v48 = vld [vmem:[#allocation8 + $0x10] sm:$0xff]  ;;  %v250_v49 = vld [vmem:[#allocation8 + $0x8] sm:$0xff]  ;;  %v249_v51 = vld [vmem:[#allocation8] sm:$0xff] }
  0x42   :  { %426 = vmatpush3.msra.mxu0 %v84_v15  ;;  %461 = vmatpush3.msra.mxu1 %v170_v16 }
  0x43   :  { %427 = vmatprep.subr.mxu0 %v639_v0  ;;  %462 = vmatprep.subr.mxu1 %v639_v0 }
  0x44   :  { %428 = vmatpush3.msra.mxu0 %v83_v17  ;;  %463 = vmatpush3.msra.mxu1 %v169_v18 }
  0x45   :  { %429 = vmatprep.subr.mxu0 %v639_v0  ;;  %464 = vmatprep.subr.mxu1 %v639_v0 }
  0x46   :  { %430 = vmatpush3.msra.mxu0 %v82_v19  ;;  %465 = vmatpush3.msra.mxu1 %v168_v20 }
  0x47   :  { %431 = vmatprep.subr.mxu0 %v639_v0  ;;  %466 = vmatprep.subr.mxu1 %v639_v0 }
  0x48   :  { %432 = vmatpush3.msra.mxu0 %v81_v21  ;;  %467 = vmatpush3.msra.mxu1 %v167_v22 }
  0x49   :  { %433 = vmatprep.subr.mxu0 %v639_v0  ;;  %468 = vmatprep.subr.mxu1 %v639_v0 }
  0x4a   :  { %434 = vmatpush3.msra.mxu0 %v80_v23  ;;  %469 = vmatpush3.msra.mxu1 %v166_v24 }
  0x4b   :  { %435 = vmatprep.subr.mxu0 %v639_v0  ;;  %470 = vmatprep.subr.mxu1 %v639_v0 }
  0x4c   :  { %436 = vmatpush3.msra.mxu0 %v79_v25  ;;  %471 = vmatpush3.msra.mxu1 %v165_v26 }
  0x4d   :  { %437 = vmatprep.subr.mxu0 %v639_v0  ;;  %472 = vmatprep.subr.mxu1 %v639_v0 }
  0x4e   :  { %438 = vmatpush3.msra.mxu0 %v78_v27  ;;  %473 = vmatpush3.msra.mxu1 %v164_v28 }
  0x4f   :  { %439 = vmatprep.subr.mxu0 %v639_v0  ;;  %474 = vmatprep.subr.mxu1 %v639_v0 }
  0x50   :  { %440 = vmatpush3.msra.mxu0 %v77_v29  ;;  %475 = vmatpush3.msra.mxu1 %v163_v30 }
  0x51   :  { %441 = vmatprep.subr.mxu0 %v639_v0  ;;  %476 = vmatprep.subr.mxu1 %v639_v0 }
  0x52   :  { %442 = vmatpush3.msra.mxu0 %v76_v31  ;;  %477 = vmatpush3.msra.mxu1 %v162_v32 }
  0x53   :  { %444 = vmatmul.mubr.f32.vlgmr.msra.gmra.mxu0 %v73_v33  ;;  %481 = vmatprep.subr.mxu0 %v639_v0 }
  0x54   :  { %479 = vmatmul.mubr.f32.vlgmr.msra.gmra.mxu1 %v75_v34  ;;  %482 = vmatpush3.msra.mxu0 %v264_v35 }
  0x55   :  { %483 = vmatprep.subr.mxu0 %v639_v0  ;;  %513 = vmatprep.mubr.msk.f32.mxu0 %vm640_vm0, %v639_v0 }
  0x56   :  { %484 = vmatpush3.msra.mxu0 %v263_v36 }
  0x57   :  { %485 = vmatprep.subr.mxu0 %v639_v0 }
  0x58   :  { %486 = vmatpush3.msra.mxu0 %v262_v37 }
  0x59   :  { %487 = vmatprep.subr.mxu0 %v639_v0 }
  0x5a   :  { %488 = vmatpush3.msra.mxu0 %v261_v38 }
  0x5b   :  { %489 = vmatprep.subr.mxu0 %v639_v0 }
  0x5c   :  { %490 = vmatpush3.msra.mxu0 %v260_v39 }
  0x5d   :  { %491 = vmatprep.subr.mxu0 %v639_v0 }
  0x5e   :  { %492 = vmatpush3.msra.mxu0 %v259_v40 }
  0x5f   :  { %493 = vmatprep.subr.mxu0 %v639_v0 }
  0x60   :  { %494 = vmatpush3.msra.mxu0 %v258_v41 }
  0x61   :  { %495 = vmatprep.subr.mxu0 %v639_v0 }
  0x62   :  { %496 = vmatpush3.msra.mxu0 %v257_v42 }
  0x63   :  { %497 = vmatprep.subr.mxu0 %v639_v0 }
  0x64   :  { %498 = vmatpush3.msra.mxu0 %v256_v43 }
  0x65   :  { %499 = vmatprep.subr.mxu0 %v639_v0 }
  0x66   :  { %500 = vmatpush3.msra.mxu0 %v255_v44 }
  0x67   :  { %501 = vmatprep.subr.mxu0 %v639_v0 }
  0x68   :  { %502 = vmatpush3.msra.mxu0 %v254_v45 }
  0x69   :  { %503 = vmatprep.subr.mxu0 %v639_v0 }
  0x6a   :  { %504 = vmatpush3.msra.mxu0 %v253_v46 }
  0x6b   :  { %505 = vmatprep.subr.mxu0 %v639_v0 }
  0x6c   :  { %506 = vmatpush3.msra.mxu0 %v252_v47 }
  0x6d   :  { %507 = vmatprep.subr.mxu0 %v639_v0 }
  0x6e   :  { %508 = vmatpush3.msra.mxu0 %v251_v48 }
  0x6f   :  { %509 = vmatprep.subr.mxu0 %v639_v0 }
  0x70   :  { %510 = vmatpush3.msra.mxu0 %v250_v49 }
  0x71   :  { %511 = vmatprep.subr.mxu0 %v639_v0 }
  0x72   :  { %512 = vmatpush3.msra.mxu0 %v249_v51 }
  0x73   :  { %514 = vmatmul.mubr.f32.vlgmr.msra.gmra.mxu0 %v248_v50 }
 0x113   :  { %v158_v52 = vpop.f32.mrf.mxu0 }
 0x114   :  { %v244_v53 = vpop.f32.mrf.mxu1 }
 0x115   :  { %v335_v54 = vsub.f32 %v158_v52, %v244_v53  ;;  %v445_v55 = vpop.f32.mrf.mxu0 }
 0x116   :  { %v480_v56 = vpop.f32.mrf.mxu1 }
 0x117   :  { %336 = vst [vmem:[#allocation10] sm:$0xff] %v335_v54 }
 0x133   :  { %v331_v57 = vpop.f32.mrf.mxu0 }
 0x134   :  { %v337_v58 = vsub.f32 %v331_v57, %v158_v52 }
 0x135   :  { %v515_v59 = vpop.f32.mrf.mxu0 }
 0x136   :  { %v338_v60 = vsub.f32 %v337_v58, %v244_v53 }
 0x138   :  { %340 = vst [vmem:[#allocation10 + $0x8] sm:$0xff] %v338_v60 }
 0x139   :  { %616 = shalt.err (!%p613_p10)
}
 0x13a   :  { %352 = dma.vmem_to_hbm [thread:$0]  %s347_s3, 256, %s755_s4, [#allocation4], %s635_s20, %s635_s20, %s636_s21  }
 0x13b   :  { %631 = dma.done.wait [#allocation4], 256  }
 0x13c   :  { %632 = vsyncadd [#allocation4], 4294967040 }
 0x13d   :  { %356 = vsyncpa [#allocation3], 1 }
 0x13e   :  { %357 = vsyncpa [#allocation6], 1 }
 0x13f   :  { %358 = vsyncpa [#allocation9], 1 }
 0x140   :  { %359 = vsyncpa [#allocation4], 1 }

</bundles_post_ra>
